<compile_context>
chip_gen: v5e
topology: v5e:2x2
jax: 0.10.0
libtpu: 0.0.40
codegen_flags: <defaults>
</compile_context>

<pallas_src>
import functools
import math

import jax
import jax.numpy as jnp
from jax import lax
from jax.experimental import pallas as pl
from jax.experimental.pallas import tpu as pltpu


def _round_up(x, m):
    return -(-x // m) * m


def _vmem_capacity_bytes():
    try:
        return int(pltpu.get_tpu_info().vmem_capacity_bytes)
    except Exception:
        return 64 * 1024 * 1024   # conservative (v7x) fallback


def _full_attention_kernel(*refs, scale, num_heads, head_dim, apply_mask,
                           mm_dtype):
    if apply_mask:
        q_ref, kt_ref, v_ref, qm_ref, km_ref, o_ref, acc_ref = refs
    else:
        q_ref, kt_ref, v_ref, o_ref, acc_ref = refs

    q = q_ref[0]        # (TL, H*D)  compute dtype (bf16 or f32)
    kt = kt_ref[0]      # (H*D, S)   compute dtype, masked K columns pre-zeroed
    v = v_ref[0]        # (S, H*D)   compute dtype

    if apply_mask:
        qm_i = qm_ref[0]            # (TL, 1) int32
        km_i = km_ref[0]            # (1, S)  int32
        # Additive f32 mask bias, hoisted out of the head loop.  Masked K rows
        # were zeroed in the wrapper and masked Q rows are zeroed via qscale,
        # so `score + bias` reproduces masked_fill(~fill, -1e9) exactly
        # (fully-masked query rows -> uniform softmax, same as the reference).
        bias = jnp.where(jnp.logical_and(qm_i != 0, km_i != 0),
                         jnp.float32(0.0),
                         jnp.float32(-1000000000.0))          # (TL, S)
        qscale = jnp.float32(scale) * qm_i.astype(jnp.float32)   # (TL, 1)
    else:
        qscale = jnp.float32(scale)

    # Fold softmax temperature (and q-mask zeroing) into Q: one (TL, H*D) mul.
    qc = (q.astype(jnp.float32) * qscale).astype(mm_dtype)

    for h in range(num_heads):                 # static, unrolled head loop
        lo = h * head_dim
        hi = lo + head_dim
        # NN-form QK against the pre-transposed K block (aligned sublane slice).
        s = lax.dot_general(qc[:, lo:hi], kt[lo:hi, :],
                            (((1,), (0,)), ((), ())),
                            preferred_element_type=jnp.float32)   # (TL, S)
        if apply_mask:
            s = s + bias

        # Numerically stable softmax over S (f32); normalization deferred.
        s = s - jnp.max(s, axis=-1, keepdims=True)
        p = jnp.exp(s)
        denom = jnp.sum(p, axis=-1, keepdims=True)                # (TL, 1)
        r = pl.reciprocal(denom, approx=True)                     # EUP vrcp
        r = r * (2.0 - denom * r)        # one Newton step -> ~f32 accurate

        # PV matmul (f32 accumulation), then normalize the small (TL, D) tile.
        oh = lax.dot_general(p.astype(mm_dtype), v[:, lo:hi],
                             (((1,), (0,)), ((), ())),
                             preferred_element_type=jnp.float32)  # (TL, D)
        acc_ref[:, lo:hi] = oh * r

    # Single full-lane-width store of the head-fused tile.
    o_ref[0] = acc_ref[...].astype(o_ref.dtype)


def full_attention(queries, keys, values, q_mask=None, kv_mask=None, *,
                   block_l=None, use_bf16_matmul=True):
    """Pallas implementation of FullAttention.forward (use_dropout=False).

    queries: [N, L, H, D], keys/values: [N, S, H, D]
    q_mask: [N, L], kv_mask: [N, S] (optional)
    returns: [N, L, H, D]
    Note: bf16 matmuls (default) and the approx reciprocal are not bit-exact
    vs. a pure-f32 reference; set use_bf16_matmul=False for tight numerics.
    """
    N, L, H, D = queries.shape
    S = keys.shape[1]
    HD = H * D
    scale = 1.0 / math.sqrt(D)
    apply_mask = (q_mask is not None) and (kv_mask is not None)

    vmem_cap = _vmem_capacity_bytes()
    if block_l is None:
        # Smaller query tile on 64 MiB-VMEM parts (v7x), larger on v5e/v6e.
        block_l = 128 if vmem_cap <= 64 * 1024 * 1024 else 256

    mm_dtype = jnp.bfloat16 if use_bf16_matmul else queries.dtype

    # Head-fused, lane-dense layout (free reshapes: trailing dims contiguous).
    q = queries.reshape(N, L, HD)
    k = keys.reshape(N, S, HD)
    v = values.reshape(N, S, HD)

    if apply_mask:
        # Zero masked key rows so the in-kernel additive -1e9 bias reproduces
        # masked_fill exactly (fused with the transpose/cast pass over K).
        k = k * kv_mask.astype(k.dtype)[:, :, None]

    # Pre-transpose K once in HBM -> (N, H*D, S): per-head kernel slices become
    # aligned sublane slices, freeing the XLUs for the softmax reductions.
    kt = jnp.transpose(k, (0, 2, 1))

    if use_bf16_matmul:
        q = q.astype(jnp.bfloat16)
        kt = kt.astype(jnp.bfloat16)
        v = v.astype(jnp.bfloat16)

    # Tile the query axis; pad L up to a multiple of the tile if needed.
    tl = min(block_l, _round_up(L, 8))
    lp = _round_up(L, tl)
    if lp != L:
        q = jnp.pad(q, ((0, 0), (0, lp - L), (0, 0)))
    n_lb = lp // tl

    args = [q, kt, v]
    in_specs = [
        pl.BlockSpec((1, tl, HD), lambda n, l: (n, l, 0)),   # Q tile
        pl.BlockSpec((1, HD, S), lambda n, l: (n, 0, 0)),    # K^T (const over l)
        pl.BlockSpec((1, S, HD), lambda n, l: (n, 0, 0)),    # V   (const over l)
    ]
    if apply_mask:
        qm = q_mask.reshape(N, L, 1).astype(jnp.int32)
        if lp != L:
            qm = jnp.pad(qm, ((0, 0), (0, lp - L), (0, 0)))  # pad rows masked out
        km = kv_mask.reshape(N, 1, S).astype(jnp.int32)
        args += [qm, km]
        in_specs += [
            pl.BlockSpec((1, tl, 1), lambda n, l: (n, l, 0)),   # q_mask
            pl.BlockSpec((1, 1, S), lambda n, l: (n, 0, 0)),    # kv_mask
        ]
    # (When masks are absent, no dummy mask arrays are allocated or DMA'd.)

    ci = 2 if use_bf16_matmul else queries.dtype.itemsize
    oi = queries.dtype.itemsize
    needed = (2 * ci * (tl * HD + 2 * S * HD)   # double-buffered Q, K^T, V
              + 2 * oi * tl * HD                # double-buffered O
              + 4 * tl * HD                     # f32 accumulator scratch
              + 4 * 4 * tl * S)                 # bias + live score/prob blocks
    vmem_limit = int(min(100 * 1024 * 1024,
                         int(0.85 * vmem_cap),
                         max(32 * 1024 * 1024, 2 * needed)))

    cost = pl.CostEstimate(
        flops=int(4 * N * H * L * S * D),
        transcendentals=int(N * H * L * S),
        bytes_accessed=int(ci * (N * lp * HD + 2 * N * S * HD)
                           + oi * N * lp * HD
                           + 4 * (N * lp + N * S)),
    )

    out = pl.pallas_call(
        functools.partial(_full_attention_kernel, scale=scale, num_heads=H,
                          head_dim=D, apply_mask=apply_mask, mm_dtype=mm_dtype),
        out_shape=jax.ShapeDtypeStruct((N, lp, HD), queries.dtype),
        grid=(N, n_lb),
        in_specs=in_specs,
        out_specs=pl.BlockSpec((1, tl, HD), lambda n, l: (n, l, 0)),
        scratch_shapes=[pltpu.VMEM((tl, HD), jnp.float32)],
        compiler_params=pltpu.CompilerParams(
            dimension_semantics=("parallel", "parallel"),
            vmem_limit_bytes=vmem_limit),
        cost_estimate=cost,
    )(*args)

    return out[:, :L].reshape(N, L, H, D)


def _reference(queries, keys, values, q_mask, kv_mask):
    """Pure-JAX reference mirroring the PyTorch module (f32 everywhere)."""
    D = queries.shape[3]
    qk = jnp.einsum('nlhd,nshd->nlsh', queries, keys,
                    precision=lax.Precision.HIGHEST)
    if kv_mask is not None:
        fill = (q_mask[:, :, None, None] * kv_mask[:, None, :, None]) == 1
        qk = jnp.where(fill, qk, -1000000000.0)
    a = jax.nn.softmax(qk / math.sqrt(D), axis=2)
    return jnp.einsum('nlsh,nshd->nlhd', a, values,
                      precision=lax.Precision.HIGHEST)


if __name__ == "__main__":
    N, L, S, H, D = 2, 16, 16, 4, 32   # H*D = 128 -> lane-dense output slab

    key = jax.random.PRNGKey(0)
    kq, kk, kv, kmq, kmk, kq2, km2 = jax.random.split(key, 7)
    queries = jax.random.normal(kq, (N, L, H, D), dtype=jnp.float32)
    keys = jax.random.normal(kk, (N, S, H, D), dtype=jnp.float32)
    values = jax.random.normal(kv, (N, S, H, D), dtype=jnp.float32)
    # Binary masks with some masked-out positions (keep at least one valid key).
    q_mask = (jax.random.uniform(kmq, (N, L)) > 0.2).astype(jnp.float32)
    kv_mask = (jax.random.uniform(kmk, (N, S)) > 0.2).astype(jnp.float32)
    kv_mask = kv_mask.at[:, 0].set(1.0)

    ref = _reference(queries, keys, values, q_mask, kv_mask)

    # 1) f32-matmul path: tight check against the pure-JAX reference.
    out_f32 = jax.block_until_ready(
        full_attention(queries, keys, values, q_mask, kv_mask,
                       use_bf16_matmul=False))
    assert out_f32.shape == (N, L, H, D)
    assert jnp.allclose(out_f32, ref, atol=1e-4, rtol=1e-4), "f32 path mismatch"

    # 2) Default bf16-matmul fast path (f32 accumulation): looser tolerance.
    out_bf16 = jax.block_until_ready(
        full_attention(queries, keys, values, q_mask, kv_mask))
    assert jnp.allclose(out_bf16, ref, atol=2e-2, rtol=2e-2), "bf16 path mismatch"

    # 3) No-mask path (mask inputs not passed to the kernel at all).
    out_nm = jax.block_until_ready(
        full_attention(queries, keys, values, use_bf16_matmul=False))
    ref_nm = _reference(queries, keys, values, None, None)
    assert jnp.allclose(out_nm, ref_nm, atol=1e-4, rtol=1e-4), "no-mask mismatch"

    # 4) Exercise the L-tiling / padding path (multiple query tiles, padded L).
    L2 = 20
    q2 = jax.random.normal(kq2, (N, L2, H, D), dtype=jnp.float32)
    qm2 = (jax.random.uniform(km2, (N, L2)) > 0.2).astype(jnp.float32)
    out_t = jax.block_until_ready(
        full_attention(q2, keys, values, qm2, kv_mask,
                       block_l=8, use_bf16_matmul=False))
    ref_t = _reference(q2, keys, values, qm2, kv_mask)
    assert out_t.shape == (N, L2, H, D)
    assert jnp.allclose(out_t, ref_t, atol=1e-4, rtol=1e-4), "tiled path mismatch"

    print("KERNEL_OK")
</pallas_src>

<mosaic_0001>
module attributes {stable_mosaic.version = 11 : i64} {
  func.func @_full_attention_kernel(%arg0: i32, %arg1: i32, %arg2: memref<1x16x128xf32, #tpu.memory_space<vmem>>, %arg3: memref<1x128x16xf32, #tpu.memory_space<vmem>>, %arg4: memref<1x16x128xf32, #tpu.memory_space<vmem>>, %arg5: memref<1x16x1xi32, #tpu.memory_space<vmem>>, %arg6: memref<1x1x16xi32, #tpu.memory_space<vmem>>, %arg7: memref<1x16x128xf32, #tpu.memory_space<vmem>>, %arg8: memref<16x128xf32, #tpu.memory_space<vmem>>) attributes {dimension_semantics = [#tpu.dimension_semantics<parallel>, #tpu.dimension_semantics<parallel>], iteration_bounds = array<i64: 2, 1>, scalar_prefetch = 0 : i64, scratch_operands = 1 : i64, tpu.core_type = #tpu.core_type<tc>, window_params = [{transform_indices = @transform_0, window_bounds = array<i64: 1, 16, 128>}, {transform_indices = @transform_1, window_bounds = array<i64: 1, 128, 16>}, {transform_indices = @transform_2, window_bounds = array<i64: 1, 16, 128>}, {transform_indices = @transform_3, window_bounds = array<i64: 1, 16, 1>}, {transform_indices = @transform_4, window_bounds = array<i64: 1, 1, 16>}, {transform_indices = @transform_5, window_bounds = array<i64: 1, 16, 128>}]} {
    %c0 = arith.constant 0 : index
    %c0_0 = arith.constant 0 : index
    %c0_1 = arith.constant 0 : index
    %0 = vector.load %arg2[%c0, %c0_0, %c0_1] : memref<1x16x128xf32, #tpu.memory_space<vmem>>, vector<1x16x128xf32>
    %1 = vector.shape_cast %0 : vector<1x16x128xf32> to vector<16x128xf32>
    %c0_2 = arith.constant 0 : index
    %c0_3 = arith.constant 0 : index
    %c0_4 = arith.constant 0 : index
    %2 = vector.load %arg3[%c0_2, %c0_3, %c0_4] : memref<1x128x16xf32, #tpu.memory_space<vmem>>, vector<1x128x16xf32>
    %3 = vector.shape_cast %2 : vector<1x128x16xf32> to vector<128x16xf32>
    %c0_5 = arith.constant 0 : index
    %c0_6 = arith.constant 0 : index
    %c0_7 = arith.constant 0 : index
    %4 = vector.load %arg4[%c0_5, %c0_6, %c0_7] : memref<1x16x128xf32, #tpu.memory_space<vmem>>, vector<1x16x128xf32>
    %5 = vector.shape_cast %4 : vector<1x16x128xf32> to vector<16x128xf32>
    %c0_8 = arith.constant 0 : index
    %c0_9 = arith.constant 0 : index
    %c0_10 = arith.constant 0 : index
    %6 = vector.load %arg5[%c0_8, %c0_9, %c0_10] : memref<1x16x1xi32, #tpu.memory_space<vmem>>, vector<1x16x1xi32>
    %7 = vector.shape_cast %6 : vector<1x16x1xi32> to vector<16x1xi32>
    %c0_11 = arith.constant 0 : index
    %c0_12 = arith.constant 0 : index
    %c0_13 = arith.constant 0 : index
    %8 = vector.load %arg6[%c0_11, %c0_12, %c0_13] : memref<1x1x16xi32, #tpu.memory_space<vmem>>, vector<1x1x16xi32>
    %9 = vector.shape_cast %8 : vector<1x1x16xi32> to vector<1x16xi32>
    %c0_i32 = arith.constant 0 : i32
    %10 = vector.broadcast %c0_i32 : i32 to vector<16x1xi32>
    %11 = arith.cmpi ne, %7, %10 : vector<16x1xi32>
    %c0_i32_14 = arith.constant 0 : i32
    %12 = vector.broadcast %c0_i32_14 : i32 to vector<1x16xi32>
    %13 = arith.cmpi ne, %9, %12 : vector<1x16xi32>
    %14 = vector.broadcast %11 : vector<16x1xi1> to vector<16x16xi1>
    %15 = vector.broadcast %13 : vector<1x16xi1> to vector<16x16xi1>
    %16 = arith.andi %14, %15 : vector<16x16xi1>
    %cst = arith.constant 0.000000e+00 : f32
    %cst_15 = arith.constant -1.000000e+09 : f32
    %17 = vector.broadcast %cst : f32 to vector<16x16xf32>
    %18 = vector.broadcast %cst_15 : f32 to vector<16x16xf32>
    %19 = arith.select %16, %17, %18 : vector<16x16xi1>, vector<16x16xf32>
    %20 = arith.sitofp %7 : vector<16x1xi32> to vector<16x1xf32>
    %cst_16 = arith.constant 0.176776692 : f32
    %21 = vector.broadcast %cst_16 : f32 to vector<16x1xf32>
    %22 = arith.mulf %21, %20 : vector<16x1xf32>
    %23 = vector.broadcast %22 : vector<16x1xf32> to vector<16x128xf32>
    %24 = arith.mulf %1, %23 : vector<16x128xf32>
    %25 = vector.extract_strided_slice %24 {offsets = [0, 0], sizes = [16, 32], strides = [1, 1]} : vector<16x128xf32> to vector<16x32xf32>
    %26 = vector.extract_strided_slice %3 {offsets = [0, 0], sizes = [32, 16], strides = [1, 1]} : vector<128x16xf32> to vector<32x16xf32>
    %cst_17 = arith.constant dense<0.000000e+00> : vector<16x16xf32>
    %27 = tpu.matmul %25, %26, %cst_17 {dimension_numbers = #tpu.dot_dimension_numbers<[1], [0], [0], [1], [0, 0, 1, 1], [], []>} : vector<16x32xf32>, vector<32x16xf32>, vector<16x16xf32> -> vector<16x16xf32>
    %28 = arith.addf %27, %19 : vector<16x16xf32>
    %cst_18 = arith.constant dense<0xFF800000> : vector<16xf32>
    %29 = vector.multi_reduction <maximumf>, %28, %cst_18 [1] : vector<16x16xf32> to vector<16xf32>
    %30 = vector.shape_cast %29 : vector<16xf32> to vector<16x1xf32>
    %31 = vector.broadcast %30 : vector<16x1xf32> to vector<16x16xf32>
    %32 = arith.subf %28, %31 : vector<16x16xf32>
    %33 = math.exp %32 : vector<16x16xf32>
    %cst_19 = arith.constant dense<0.000000e+00> : vector<16xf32>
    %34 = vector.multi_reduction <add>, %33, %cst_19 [1] : vector<16x16xf32> to vector<16xf32>
    %35 = vector.shape_cast %34 : vector<16xf32> to vector<16x1xf32>
    %36 = tpu.reciprocal %35 {approx = true} : vector<16x1xf32> -> vector<16x1xf32>
    %37 = arith.mulf %35, %36 : vector<16x1xf32>
    %cst_20 = arith.constant 2.000000e+00 : f32
    %38 = vector.broadcast %cst_20 : f32 to vector<16x1xf32>
    %39 = arith.subf %38, %37 : vector<16x1xf32>
    %40 = arith.mulf %36, %39 : vector<16x1xf32>
    %41 = vector.extract_strided_slice %5 {offsets = [0, 0], sizes = [16, 32], strides = [1, 1]} : vector<16x128xf32> to vector<16x32xf32>
    %cst_21 = arith.constant dense<0.000000e+00> : vector<16x32xf32>
    %42 = tpu.matmul %33, %41, %cst_21 {dimension_numbers = #tpu.dot_dimension_numbers<[1], [0], [0], [1], [0, 0, 1, 1], [], []>} : vector<16x16xf32>, vector<16x32xf32>, vector<16x32xf32> -> vector<16x32xf32>
    %43 = vector.broadcast %40 : vector<16x1xf32> to vector<16x32xf32>
    %44 = arith.mulf %42, %43 : vector<16x32xf32>
    %c0_22 = arith.constant 0 : index
    %c0_23 = arith.constant 0 : index
    %45 = vector.load %arg8[%c0_22, %c0_23] : memref<16x128xf32, #tpu.memory_space<vmem>>, vector<16x32xf32>
    tpu.vector_store %arg8[%c0_22, %c0_23], %44 {strides = array<i32>} : memref<16x128xf32, #tpu.memory_space<vmem>>, vector<16x32xf32>,
    %46 = vector.extract_strided_slice %24 {offsets = [0, 32], sizes = [16, 32], strides = [1, 1]} : vector<16x128xf32> to vector<16x32xf32>
    %47 = vector.extract_strided_slice %3 {offsets = [32, 0], sizes = [32, 16], strides = [1, 1]} : vector<128x16xf32> to vector<32x16xf32>
    %cst_24 = arith.constant dense<0.000000e+00> : vector<16x16xf32>
    %48 = tpu.matmul %46, %47, %cst_24 {dimension_numbers = #tpu.dot_dimension_numbers<[1], [0], [0], [1], [0, 0, 1, 1], [], []>} : vector<16x32xf32>, vector<32x16xf32>, vector<16x16xf32> -> vector<16x16xf32>
    %49 = arith.addf %48, %19 : vector<16x16xf32>
    %cst_25 = arith.constant dense<0xFF800000> : vector<16xf32>
    %50 = vector.multi_reduction <maximumf>, %49, %cst_25 [1] : vector<16x16xf32> to vector<16xf32>
    %51 = vector.shape_cast %50 : vector<16xf32> to vector<16x1xf32>
    %52 = vector.broadcast %51 : vector<16x1xf32> to vector<16x16xf32>
    %53 = arith.subf %49, %52 : vector<16x16xf32>
    %54 = math.exp %53 : vector<16x16xf32>
    %cst_26 = arith.constant dense<0.000000e+00> : vector<16xf32>
    %55 = vector.multi_reduction <add>, %54, %cst_26 [1] : vector<16x16xf32> to vector<16xf32>
    %56 = vector.shape_cast %55 : vector<16xf32> to vector<16x1xf32>
    %57 = tpu.reciprocal %56 {approx = true} : vector<16x1xf32> -> vector<16x1xf32>
    %58 = arith.mulf %56, %57 : vector<16x1xf32>
    %cst_27 = arith.constant 2.000000e+00 : f32
    %59 = vector.broadcast %cst_27 : f32 to vector<16x1xf32>
    %60 = arith.subf %59, %58 : vector<16x1xf32>
    %61 = arith.mulf %57, %60 : vector<16x1xf32>
    %62 = vector.extract_strided_slice %5 {offsets = [0, 32], sizes = [16, 32], strides = [1, 1]} : vector<16x128xf32> to vector<16x32xf32>
    %cst_28 = arith.constant dense<0.000000e+00> : vector<16x32xf32>
    %63 = tpu.matmul %54, %62, %cst_28 {dimension_numbers = #tpu.dot_dimension_numbers<[1], [0], [0], [1], [0, 0, 1, 1], [], []>} : vector<16x16xf32>, vector<16x32xf32>, vector<16x32xf32> -> vector<16x32xf32>
    %64 = vector.broadcast %61 : vector<16x1xf32> to vector<16x32xf32>
    %65 = arith.mulf %63, %64 : vector<16x32xf32>
    %c0_29 = arith.constant 0 : index
    %c32 = arith.constant 32 : index
    %66 = vector.load %arg8[%c0_29, %c32] : memref<16x128xf32, #tpu.memory_space<vmem>>, vector<16x32xf32>
    tpu.vector_store %arg8[%c0_29, %c32], %65 {strides = array<i32>} : memref<16x128xf32, #tpu.memory_space<vmem>>, vector<16x32xf32>,
    %67 = vector.extract_strided_slice %24 {offsets = [0, 64], sizes = [16, 32], strides = [1, 1]} : vector<16x128xf32> to vector<16x32xf32>
    %68 = vector.extract_strided_slice %3 {offsets = [64, 0], sizes = [32, 16], strides = [1, 1]} : vector<128x16xf32> to vector<32x16xf32>
    %cst_30 = arith.constant dense<0.000000e+00> : vector<16x16xf32>
    %69 = tpu.matmul %67, %68, %cst_30 {dimension_numbers = #tpu.dot_dimension_numbers<[1], [0], [0], [1], [0, 0, 1, 1], [], []>} : vector<16x32xf32>, vector<32x16xf32>, vector<16x16xf32> -> vector<16x16xf32>
    %70 = arith.addf %69, %19 : vector<16x16xf32>
    %cst_31 = arith.constant dense<0xFF800000> : vector<16xf32>
    %71 = vector.multi_reduction <maximumf>, %70, %cst_31 [1] : vector<16x16xf32> to vector<16xf32>
    %72 = vector.shape_cast %71 : vector<16xf32> to vector<16x1xf32>
    %73 = vector.broadcast %72 : vector<16x1xf32> to vector<16x16xf32>
    %74 = arith.subf %70, %73 : vector<16x16xf32>
    %75 = math.exp %74 : vector<16x16xf32>
    %cst_32 = arith.constant dense<0.000000e+00> : vector<16xf32>
    %76 = vector.multi_reduction <add>, %75, %cst_32 [1] : vector<16x16xf32> to vector<16xf32>
    %77 = vector.shape_cast %76 : vector<16xf32> to vector<16x1xf32>
    %78 = tpu.reciprocal %77 {approx = true} : vector<16x1xf32> -> vector<16x1xf32>
    %79 = arith.mulf %77, %78 : vector<16x1xf32>
    %cst_33 = arith.constant 2.000000e+00 : f32
    %80 = vector.broadcast %cst_33 : f32 to vector<16x1xf32>
    %81 = arith.subf %80, %79 : vector<16x1xf32>
    %82 = arith.mulf %78, %81 : vector<16x1xf32>
    %83 = vector.extract_strided_slice %5 {offsets = [0, 64], sizes = [16, 32], strides = [1, 1]} : vector<16x128xf32> to vector<16x32xf32>
    %cst_34 = arith.constant dense<0.000000e+00> : vector<16x32xf32>
    %84 = tpu.matmul %75, %83, %cst_34 {dimension_numbers = #tpu.dot_dimension_numbers<[1], [0], [0], [1], [0, 0, 1, 1], [], []>} : vector<16x16xf32>, vector<16x32xf32>, vector<16x32xf32> -> vector<16x32xf32>
    %85 = vector.broadcast %82 : vector<16x1xf32> to vector<16x32xf32>
    %86 = arith.mulf %84, %85 : vector<16x32xf32>
    %c0_35 = arith.constant 0 : index
    %c64 = arith.constant 64 : index
    %87 = vector.load %arg8[%c0_35, %c64] : memref<16x128xf32, #tpu.memory_space<vmem>>, vector<16x32xf32>
    tpu.vector_store %arg8[%c0_35, %c64], %86 {strides = array<i32>} : memref<16x128xf32, #tpu.memory_space<vmem>>, vector<16x32xf32>,
    %88 = vector.extract_strided_slice %24 {offsets = [0, 96], sizes = [16, 32], strides = [1, 1]} : vector<16x128xf32> to vector<16x32xf32>
    %89 = vector.extract_strided_slice %3 {offsets = [96, 0], sizes = [32, 16], strides = [1, 1]} : vector<128x16xf32> to vector<32x16xf32>
    %cst_36 = arith.constant dense<0.000000e+00> : vector<16x16xf32>
    %90 = tpu.matmul %88, %89, %cst_36 {dimension_numbers = #tpu.dot_dimension_numbers<[1], [0], [0], [1], [0, 0, 1, 1], [], []>} : vector<16x32xf32>, vector<32x16xf32>, vector<16x16xf32> -> vector<16x16xf32>
    %91 = arith.addf %90, %19 : vector<16x16xf32>
    %cst_37 = arith.constant dense<0xFF800000> : vector<16xf32>
    %92 = vector.multi_reduction <maximumf>, %91, %cst_37 [1] : vector<16x16xf32> to vector<16xf32>
    %93 = vector.shape_cast %92 : vector<16xf32> to vector<16x1xf32>
    %94 = vector.broadcast %93 : vector<16x1xf32> to vector<16x16xf32>
    %95 = arith.subf %91, %94 : vector<16x16xf32>
    %96 = math.exp %95 : vector<16x16xf32>
    %cst_38 = arith.constant dense<0.000000e+00> : vector<16xf32>
    %97 = vector.multi_reduction <add>, %96, %cst_38 [1] : vector<16x16xf32> to vector<16xf32>
    %98 = vector.shape_cast %97 : vector<16xf32> to vector<16x1xf32>
    %99 = tpu.reciprocal %98 {approx = true} : vector<16x1xf32> -> vector<16x1xf32>
    %100 = arith.mulf %98, %99 : vector<16x1xf32>
    %cst_39 = arith.constant 2.000000e+00 : f32
    %101 = vector.broadcast %cst_39 : f32 to vector<16x1xf32>
    %102 = arith.subf %101, %100 : vector<16x1xf32>
    %103 = arith.mulf %99, %102 : vector<16x1xf32>
    %104 = vector.extract_strided_slice %5 {offsets = [0, 96], sizes = [16, 32], strides = [1, 1]} : vector<16x128xf32> to vector<16x32xf32>
    %cst_40 = arith.constant dense<0.000000e+00> : vector<16x32xf32>
    %105 = tpu.matmul %96, %104, %cst_40 {dimension_numbers = #tpu.dot_dimension_numbers<[1], [0], [0], [1], [0, 0, 1, 1], [], []>} : vector<16x16xf32>, vector<16x32xf32>, vector<16x32xf32> -> vector<16x32xf32>
    %106 = vector.broadcast %103 : vector<16x1xf32> to vector<16x32xf32>
    %107 = arith.mulf %105, %106 : vector<16x32xf32>
    %c0_41 = arith.constant 0 : index
    %c96 = arith.constant 96 : index
    %108 = vector.load %arg8[%c0_41, %c96] : memref<16x128xf32, #tpu.memory_space<vmem>>, vector<16x32xf32>
    tpu.vector_store %arg8[%c0_41, %c96], %107 {strides = array<i32>} : memref<16x128xf32, #tpu.memory_space<vmem>>, vector<16x32xf32>,
    %c0_42 = arith.constant 0 : index
    %c0_43 = arith.constant 0 : index
    %109 = vector.load %arg8[%c0_42, %c0_43] : memref<16x128xf32, #tpu.memory_space<vmem>>, vector<16x128xf32>
    %c0_44 = arith.constant 0 : index
    %c0_45 = arith.constant 0 : index
    %c0_46 = arith.constant 0 : index
    %110 = vector.load %arg7[%c0_44, %c0_45, %c0_46] : memref<1x16x128xf32, #tpu.memory_space<vmem>>, vector<1x16x128xf32>
    %111 = vector.shape_cast %110 : vector<1x16x128xf32> to vector<16x128xf32>
    %112 = vector.shape_cast %109 : vector<16x128xf32> to vector<1x16x128xf32>
    tpu.vector_store %arg7[%c0_44, %c0_45, %c0_46], %112 {strides = array<i32>} : memref<1x16x128xf32, #tpu.memory_space<vmem>>, vector<1x16x128xf32>,
    return
  }
  func.func @transform_0(%arg0: i32, %arg1: i32) -> (i32, i32, i32) {
    %c0_i32 = arith.constant 0 : i32
    %c0_i32_0 = arith.constant 0 : i32
    return %arg0, %arg1, %c0_i32 : i32, i32, i32
  }
  func.func @transform_1(%arg0: i32, %arg1: i32) -> (i32, i32, i32) {
    %c0_i32 = arith.constant 0 : i32
    %c0_i32_0 = arith.constant 0 : i32
    %c0_i32_1 = arith.constant 0 : i32
    return %arg0, %c0_i32, %c0_i32_0 : i32, i32, i32
  }
  func.func @transform_2(%arg0: i32, %arg1: i32) -> (i32, i32, i32) {
    %c0_i32 = arith.constant 0 : i32
    %c0_i32_0 = arith.constant 0 : i32
    %c0_i32_1 = arith.constant 0 : i32
    return %arg0, %c0_i32, %c0_i32_0 : i32, i32, i32
  }
  func.func @transform_3(%arg0: i32, %arg1: i32) -> (i32, i32, i32) {
    %c0_i32 = arith.constant 0 : i32
    %c0_i32_0 = arith.constant 0 : i32
    return %arg0, %arg1, %c0_i32 : i32, i32, i32
  }
  func.func @transform_4(%arg0: i32, %arg1: i32) -> (i32, i32, i32) {
    %c0_i32 = arith.constant 0 : i32
    %c0_i32_0 = arith.constant 0 : i32
    %c0_i32_1 = arith.constant 0 : i32
    return %arg0, %c0_i32, %c0_i32_0 : i32, i32, i32
  }
  func.func @transform_5(%arg0: i32, %arg1: i32) -> (i32, i32, i32) {
    %c0_i32 = arith.constant 0 : i32
    %c0_i32_0 = arith.constant 0 : i32
    return %arg0, %arg1, %c0_i32 : i32, i32, i32
  }
}

</mosaic_0001>

<bundles_post_ra>
// kernel: tpu_custom_call.1
= control target key start
LH: loop header
LB: loop body
LE: loop exit
PB: predicated region body
PF: predicated region fallthrough
CT: control target
= control target key end

     0   :  { %10 = vsyncpa [#allocation4], 0  ;;  %s1459_s0 = inlined_call_operand.vmem [shape: f32[2,16,128], index: 0, kind: input, shape index: {}]   ;;  %s1460_s1 = inlined_call_operand.vmem [shape: f32[2,128,16], index: 1, kind: input, shape index: {}]   ;;  %s1461_s2 = inlined_call_operand.vmem [shape: f32[2,16,128], index: 2, kind: input, shape index: {}]   ;;  %s1462_s3 = inlined_call_operand.vmem [shape: s32[2,16,1], index: 3, kind: input, shape index: {}]   ;;  %s1463_s4 = inlined_call_operand.vmem [shape: s32[2,1,16], index: 4, kind: input, shape index: {}]   ;;  %s1464_s5 = inlined_call_operand.hbm [shape: f32[2,16,128], index: 5, kind: output, shape index: {}]  }
   0x1   :  { %12 = vsyncpa [#allocation4 + $0x1], 0  ;;  %s1230_s18 = smov 0   ;;  %s1232_s19 = smov 0  }
   0x2   :  { %s1234_s20 = smov 0   ;;  %s1236_s21 = smov 0  }
   0x3   :  { %s1238_s22 = smov 0   ;;  %s1240_s23 = smov 0  }
   0x4 LB: > { %s962_s24 = sadd.s32 4294967295, %s1191_s23   ;;  %s963_s25 = sadd.s32 4294967294, %s1191_s23   ;;  %s1191_s23 = sphi %s1240_s23, %s18_s23   ;;  %s1187_s22 = sphi %s1238_s22, %s1471_s22   ;;  %s1183_s21 = sphi %s1236_s21, %s1470_s21   ;;  %s1179_s20 = sphi %s1234_s20, %s1469_s20   ;;  %s1175_s19 = sphi %s1232_s19, %s1468_s19   ;;  %s1171_s18 = sphi %s1230_s18, %s1467_s18  }
   0x5   : > { %s30_s26 = sadd.s32 1, %s1187_s22  ;;  %s173_s27 = sadd.s32 1, %s1179_s20 }
   0x6   : > { %p32_p0 = scmp.ge.s32.totalorder %s30_s26, 2  ;;  %p183_p1 = scmp.ne.s32.totalorder %s1179_s20, %s1175_s19 }
   0x7   : > { %p184_p2 = scmp.eq.s32.totalorder %s962_s24, 1  ;;  %p189_p3 = scmp.ne.s32.totalorder %s1175_s19, %s1171_s18 }
   0x8   : > { %s1473_s26 = smov (%p32_p0, %s30_s26), 0  ;;  %p190_p5 = scmp.eq.s32.totalorder %s963_s25, 1 }
   0x9   : > { %p1270_p4 = por %p184_p2, %p183_p1  ;;  %s168_s29 = ssub.s32 %s1187_s22, %s1473_s26 }
   0xa   : > { %p966_p6 = scmp.ge.s32.totalorder %s1191_s23, 1  ;;  %p171_p7 = scmp.eq.s32.totalorder %s168_s29, 0 }
   0xb   : > { %p1277_p8 = por %p190_p5, %p189_p3  ;;  %p256_p9 = scmp.lt.s32.totalorder %s1191_s23, 3 }
   0xc   : > { %s1283_s6 = scalar_select %p171_p7, %s1179_s20, %s173_s27  }
   0xd   : > { %p257_p10 = pnand %p966_p6, %p256_p9 }
   0xe   : > { %p311_p11 = scmp.lt.s32.totalorder (!%p257_p10), %s1183_s21, 1  ;;  %s1194_s25 = smov (!%p257_p10), 96  }
   0xf   : > { %260 = sbr.rel (%p257_p10) target bundleno = 954 (0x3ba), region = 40  ;;  %s1195_s27 = smov (!%p257_p10), 64  }
  0x10   : > { %s1196_s29 = smov (!%p257_p10), 32   ;;  %s1133_s13 = scalar_lea.hbm (!%p257_p10), %s1464_s5, 32 }
  0x14   : > { %v1193_v0 = vmov 0   ;;  %s1289_s7 = scalar_select %p311_p11, %s1183_s21, 1  ;;  %vm403_vm2 = vcmask 261120   ;;  %v1197_v34 = vmov -1e+09   ;;  %vm433_vm7 = vcmask 130048  }
  0x15   : > { %1064 = vset.pattern.permute.xlu0 %v1193_v0  ;;  %1065 = vset.pattern.permute.xlu1 %v1193_v0  ;;  %vm597_vm10 = vcmask 523520   ;;  %vm702_vm11 = vcmask 785920   ;;  %vm807_vm12 = vcmask 1048320  }
  0x16   : > { %s1292_s8 = sshll.u32 %s1289_s7, 4  ;;  %s998_s9 = sshll.u32 %s1289_s7, 7 }
  0x17   : > { %s1298_s12 = scalar_lea.vmem %s1460_s1, %s998_s9  ;;  %s338_s15 = scalar_lea.vmem %s1462_s3, %s1292_s8 }
  0x18   : > { %v364_v1 = vld [vmem:[%s338_s15] sm:$0xff]  ;;  %v349_v2 = vld [vmem:[%s1298_s12 + $0x18] sm:$0xff]  ;;  %v348_v4 = vld [vmem:[%s1298_s12 + $0x10] sm:$0xff]  ;;  %s318_s24 = scalar_lea.vmem %s1459_s0, %s1292_s8  ;;  %s342_s11 = scalar_lea.vmem %s1463_s4, %s1289_s7 }
  0x19   : > { %v387_v3 = vcvt.s32.f32 %v364_v1  ;;  %vm367_vm0 = vcmp.ne.s32.totalorder %v364_v1, 0  ;;  %422 = vmatpush.msra.mxu0 %v349_v2  ;;  %v365_v5 = vld [vmem:[%s338_s15 + $0x8] sm:$0xff]  ;;  %v346_v11 = vld [vmem:[%s1298_s12] sm:$0xff]  ;;  %v353_v16 = vld [vmem:[%s1298_s12 + $0x38] sm:$0xff]  ;;  %s329_s14 = scalar_lea.vmem %s1461_s2, %s1292_s8  ;;  %s307_s8 = sand.u32 1, %s1175_s19  }
  0x1a   : > { %v370_v6 = vsel %vm367_vm0, 1, %v1193_v0  ;;  %v347_v7 = vld [vmem:[%s1298_s12 + $0x8] sm:$0xff]  ;;  %v388_v9 = vcvt.s32.f32 %v365_v5  ;;  %vm368_vm1 = vcmp.ne.s32.totalorder %v365_v5, 0  ;;  %v344_v13 = vld [vmem:[%s318_s24] sm:$0xff]  ;;  %v352_v17 = vld [vmem:[%s1298_s12 + $0x30] sm:$0xff]  ;;  %513 = vmatpush.msra.mxu2 %v353_v16  ;;  %s1001_s15 = sshll.u32 %s1183_s21, 4 }
  0x1b   : > { %v389_v8 = vmul.f32 0.17677669, %v387_v3  ;;  %373 = vperm.xlu1 %1065, %v370_v6   ;;  %423 = vmatpush.msra.mxu0 %v348_v4  ;;  %v371_v12 = vsel %vm368_vm1, 1, %v1193_v0  ;;  %v351_v18 = vld [vmem:[%s1298_s12 + $0x28] sm:$0xff]  ;;  %v350_v20 = vld [vmem:[%s1298_s12 + $0x20] sm:$0xff]  ;;  %v361_v24 = vld [vmem:[%s1298_s12 + $0x78] sm:$0xff] }
  0x1c   : > { %v390_v10 = vmul.f32 0.17677669, %v388_v9  ;;  %v345_v19 = vld [vmem:[%s318_s24 + $0x8] sm:$0xff]  ;;  %514 = vmatpush.msra.mxu2 %v352_v17  ;;  %v360_v25 = vld [vmem:[%s1298_s12 + $0x70] sm:$0xff]  ;;  %v366_v28 = vld [vmem:[%s342_s11] sm:$0x1]  ;;  %s828_s24 = scalar_lea.hbm %s1464_s5, %s1001_s15 }
  0x1d   : > { %393 = vperm.xlu0 %1064, %v389_v8   ;;  %424 = vmatpush.msra.mxu0 %v347_v7  ;;  %v359_v27 = vld [vmem:[%s1298_s12 + $0x68] sm:$0xff]  ;;  %v358_v29 = vld [vmem:[%s1298_s12 + $0x60] sm:$0xff]  ;;  %vm369_vm3 = vcmp.ne.s32.totalorder %v366_v28, 0  ;;  %v357_v52 = vld [vmem:[%s1298_s12 + $0x58] sm:$0xff]  ;;  %s815_s9 = scalar_lea.sflag [#allocation4], %s307_s8 }
  0x1e   : > { %515 = vmatpush.msra.mxu2 %v351_v18  ;;  %v380_v30 = vsel %vm369_vm3, 1, %v1193_v0  ;;  %v362_v46 = vld [vmem:[%s329_s14] sm:$0xff]  ;;  %v363_v47 = vld [vmem:[%s329_s14 + $0x8] sm:$0xff]  ;;  %v356_v53 = vld [vmem:[%s1298_s12 + $0x50] sm:$0xff] }
  0x1f   : > { %425 = vmatpush.msra.mxu0 %v346_v11  ;;  %v381_v32 = vperm.slane %v380_v30, 0  ;;  %v1351_v48 = vpack.i.bf16 %v362_v46, %v363_v47  ;;  %480 = vmatpush.msra.mxu1 %v363_v47  ;;  %v355_v54 = vld [vmem:[%s1298_s12 + $0x48] sm:$0xff]  ;;  %v354_v55 = vld [vmem:[%s1298_s12 + $0x40] sm:$0xff]  ;;  %s967_s12 = sshll.u32 %s307_s8, 4 }
  0x20   : > { %516 = vmatpush.msra.mxu2 %v350_v20 }
  0x21   : > { %725 = vmatpush.msrb.mxu0 %v361_v24  ;;  %vm382_vm4 = vcmp.eq.s32.totalorder %v381_v32, 1  ;;  %481 = vmatpush.msra.mxu1 %v362_v46 }
  0x23   : > { %376 = vperm.xlu1 %1065, %v371_v12   ;;  %726 = vmatpush.msrb.mxu0 %v360_v25 }
  0x24   : > { %620 = vmatpush.msrb.mxu1 %v357_v52 }
  0x25   : > { %398 = vperm.xlu0 %1064, %v390_v10   ;;  %727 = vmatpush.msrb.mxu0 %v359_v27 }
  0x26   : > { %621 = vmatpush.msrb.mxu1 %v356_v53 }
  0x27   : > { %728 = vmatpush.msrb.mxu0 %v358_v29 }
  0x28   : > { %622 = vmatpush.msrb.mxu1 %v355_v54 }
  0x2a   : > { %623 = vmatpush.msrb.mxu1 %v354_v55 }
  0x8d   : > { %v374_v26 = vpop.permute.xlu1 %373 }
  0x8e   : > { %vm378_vm5 = vcmp.eq.s32.totalorder %v374_v26, 1 }
  0x8f   : > { %v394_v14 = vpop.permute.xlu0 %393  ;;  %vm383_vm6 = vmand %vm378_vm5, %vm382_vm4 }
  0x90   : > { %v401_v15 = vmul.f32 %v394_v14, %v344_v13  ;;  %v1335_v35 = vsel %vm383_vm6, 0.0, %v1197_v34 }
  0x92   : > { %493 = vrot.lane.b32.xlu2 %v401_v15, %s1194_s25  ;;  %976 = vmatmul.msk.f32.vlgmr.msra.gmra.mxu0 %vm403_vm2, %v401_v15 }
  0x95   : > { %v377_v31 = vpop.permute.xlu1 %376 }
  0x96   : > { %vm379_vm8 = vcmp.eq.s32.totalorder %v377_v31, 1 }
  0x97   : > { %v399_v21 = vpop.permute.xlu0 %398  ;;  %vm384_vm9 = vmand %vm379_vm8, %vm382_vm4 }
  0x98   : > { %v402_v22 = vmul.f32 %v399_v21, %v345_v19  ;;  %v1340_v40 = vsel %vm384_vm9, 0.0, %v1197_v34 }
  0x9a   : > { %495 = vrot.lane.b32.xlu1 %v402_v22, %s1194_s25  ;;  %977 = vmatmul.msk.f32.gmra.mxu0 %vm403_vm2, %v402_v22 }
  0xa2   : > { %600 = vrot.lane.b32.xlu1 %v401_v15, %s1195_s27 }
  0xaa   : > { %705 = vrot.lane.b32.xlu1 %v401_v15, %s1196_s29 }
  0xb2   : > { %707 = vrot.lane.b32.xlu1 %v402_v22, %s1196_s29 }
  0xec   : > { %v494_v23 = vpop.permute.xlu2 %493 }
  0xed   : > { %980 = vmatmul.msk.f32.vlgmr.msra.gmra.mxu2 %vm403_vm2, %v494_v23 }
 0x10c   : > { %v496_v33 = vpop.permute.xlu1 %495 }
 0x10d   : > { %981 = vmatmul.msk.f32.gmra.mxu2 %vm403_vm2, %v496_v33 }
 0x10f   : > { %v427_v36 = vpop.f32.mrf.mxu0 }
 0x110   : > { %v428_v37 = vadd.f32 %v427_v36, %v1335_v35 }
 0x112   : > { %v434_v38 = vsel %vm433_vm7, %v428_v37, -inf }
 0x113   : > { %435 = vmax.xlane.f32.xlu2 %v434_v38 }
 0x114   : > { %v601_v39 = vpop.permute.xlu1 %600 }
 0x117   : > { %v430_v41 = vpop.f32.mrf.mxu0 }
 0x118   : > { %v431_v42 = vadd.f32 %v430_v41, %v1340_v40 }
 0x11a   : > { %v437_v43 = vsel %vm433_vm7, %v431_v42, -inf }
 0x11b   : > { %438 = vmax.xlane.f32.xlu0 %v437_v43 }
 0x11c   : > { %v706_v44 = vpop.permute.xlu1 %705 }
 0x11d   : > { %988 = vmatmul.msk.f32.vlgmr.msrb.gmra.mxu0 %vm403_vm2, %v706_v44 }
 0x124   : > { %v708_v45 = vpop.permute.xlu1 %707 }
 0x125   : > { %989 = vmatmul.msk.f32.gmra.mxu0 %vm403_vm2, %v708_v45 }
 0x12b   : > { %602 = vrot.lane.b32.xlu2 %v402_v22, %s1195_s27 }
 0x12f   : > { %1067 = vrot.lane.b32.xlu0 %v1351_v48, %s1194_s25 }
 0x170   : > { %v518_v49 = vpop.f32.mrf.mxu2 }
 0x171   : > { %v519_v50 = vadd.f32 %v518_v49, %v1335_v35 }
 0x173   : > { %v524_v51 = vsel %vm433_vm7, %v519_v50, -inf }
 0x174   : > { %525 = vmax.xlane.f32.xlu2 %v524_v51 }
 0x186   : > { %v436_v56 = vpop.xlane.xlu2 %435 }
 0x187   : > { %v440_v57 = vsub.f32 %v428_v37, %v436_v56 }
 0x189   : > { %v442_v58 = vmul.f32 1.442695, %v440_v57 }
 0x18b   : > { %1081 = vpow2.f32 %v442_v58 }
 0x18e   : > { %v439_v59 = vpop.xlane.xlu0 %438  ;;  %v603_v9 = vpop.permute.xlu2 %602 }
 0x18f   : > { %v441_v60 = vsub.f32 %v431_v42, %v439_v59 }
 0x190   : > { %v521_v61 = vpop.f32.mrf.mxu2 }
 0x191   : > { %v1361_v62 = vpop.eup %1081  ;;  %v444_v63 = vmul.f32 1.442695, %v441_v60  ;;  %v522_v0 = vadd.f32 %v521_v61, %v1340_v40 }
 0x192   : > { %978 = vmatmul.msk.f32.vlgmr.msra.gmra.mxu1 %vm433_vm7, %v1361_v62 }
 0x193   : > { %1083 = vpow2.f32 %v444_v63  ;;  %v527_v1 = vsel %vm433_vm7, %v522_v0, -inf }
 0x194   : > { %528 = vmax.xlane.f32.xlu1 %v527_v1 }
 0x199   : > { %v1084_v2 = vpop.eup %1083 }
 0x19a   : > { %979 = vmatmul.msk.f32.gmra.mxu1 %vm433_vm7, %v1084_v2  ;;  %v730_v3 = vpop.f32.mrf.mxu0  ;;  %v449_v18 = vsel %vm433_vm7, %v1084_v2, 0.0 }
 0x19b   : > { %v1369_v4 = vadd.f32 %v730_v3, %v1335_v35 }
 0x19d   : > { %v736_v5 = vsel %vm433_vm7, %v1369_v4, -inf }
 0x19e   : > { %737 = vmax.xlane.f32.xlu2 %v736_v5 }
 0x1a1   : > { %v1068_v10 = vpop.permute.xlu0 %1067 }
 0x1a2   : > { %984 = vmatmul.msk.f32.vlgmr.msrb.gmra.mxu1 %vm403_vm2, %v601_v39  ;;  %v733_v6 = vpop.f32.mrf.mxu0  ;;  %v1069_v11 = vunpack.i.l.bf16 %v1068_v10  ;;  %v1070_v12 = vunpack.i.h.bf16 %v1068_v10  ;;  %v446_v10 = vsel %vm433_vm7, %v1361_v62, 0.0 }
 0x1a3   : > { %v1375_v7 = vadd.f32 %v733_v6, %v1340_v40 }
 0x1a4   : > { %578 = vmatpush.msra.mxu3 %v1069_v11 }
 0x1a5   : > { %v739_v8 = vsel %vm433_vm7, %v1375_v7, -inf }
 0x1a6   : > { %740 = vmax.xlane.f32.xlu2 %v739_v8  ;;  %579 = vmatpush.msra.mxu3 %v1070_v12 }
 0x1aa   : > { %985 = vmatmul.msk.f32.gmra.mxu1 %vm403_vm2, %v603_v9 }
 0x1ad   : > { %1072 = vrot.lane.b32.xlu1 %v1351_v48, %s1195_s27 }
 0x1e7   : > { %v526_v13 = vpop.xlane.xlu2 %525 }
 0x1e8   : > { %v530_v14 = vsub.f32 %v519_v50, %v526_v13 }
 0x1ea   : > { %v532_v15 = vmul.f32 1.442695, %v530_v14 }
 0x1ec   : > { %1085 = vpow2.f32 %v532_v15 }
 0x1f2   : > { %v1086_v16 = vpop.eup %1085 }
 0x1f3   : > { %982 = vmatmul.msk.f32.vlgmr.msra.gmra.mxu3 %vm433_vm7, %v1086_v16  ;;  %v536_v17 = vsel %vm433_vm7, %v1086_v16, 0.0 }
 0x1f4   : > { %537 = vadd.xlane.f32.xlu1 %v536_v17 }
 0x1fc   : > { %450 = vadd.xlane.f32.xlu1 %v449_v18 }
 0x207   : > { %v529_v19 = vpop.xlane.xlu1 %528 }
 0x208   : > { %v531_v20 = vsub.f32 %v522_v0, %v529_v19 }
 0x20a   : > { %v534_v21 = vmul.f32 1.442695, %v531_v20 }
 0x20c   : > { %1087 = vpow2.f32 %v534_v21 }
 0x20f   : > { %v1385_v22 = vpop.f32.mrf.mxu1 }
 0x211   : > { %v738_v42 = vpop.xlane.xlu2 %737 }
 0x212   : > { %v1088_v23 = vpop.eup %1087  ;;  %v742_v46 = vsub.f32 %v1369_v4, %v738_v42 }
 0x213   : > { %983 = vmatmul.msk.f32.gmra.mxu3 %vm433_vm7, %v1088_v23  ;;  %v539_v30 = vsel %vm433_vm7, %v1088_v23, 0.0 }
 0x217   : > { %v486_v24 = vpop.f32.mrf.mxu1 }
 0x219   : > { %v741_v43 = vpop.xlane.xlu2 %740 }
 0x21a   : > { %v743_v53 = vsub.f32 %v1375_v7, %v741_v43 }
 0x21c   : > { %v746_v58 = vmul.f32 1.442695, %v743_v53 }
 0x21f   : > { %v625_v25 = vpop.f32.mrf.mxu1  ;;  %v1073_v32 = vpop.permute.xlu1 %1072 }
 0x220   : > { %v626_v26 = vadd.f32 %v625_v25, %v1335_v35  ;;  %v1074_v39 = vunpack.i.l.bf16 %v1073_v32  ;;  %v1075_v41 = vunpack.i.h.bf16 %v1073_v32 }
 0x222   : > { %v631_v27 = vsel %vm433_vm7, %v626_v26, -inf  ;;  %683 = vmatpush.msrb.mxu3 %v1074_v39 }
 0x223   : > { %632 = vmax.xlane.f32.xlu0 %v631_v27 }
 0x224   : > { %684 = vmatpush.msrb.mxu3 %v1075_v41 }
 0x227   : > { %v628_v28 = vpop.f32.mrf.mxu1 }
 0x228   : > { %v629_v29 = vadd.f32 %v628_v28, %v1340_v40 }
 0x22a   : > { %v634_v31 = vsel %vm433_vm7, %v629_v29, -inf }
 0x22b   : > { %540 = vadd.xlane.f32.xlu0 %v539_v30  ;;  %635 = vmax.xlane.f32.xlu2 %v634_v31 }
 0x243   : > { %1077 = vrot.lane.b32.xlu2 %v1351_v48, %s1196_s29  ;;  %v744_v48 = vmul.f32 1.442695, %v742_v46 }
 0x267   : > { %v1395_v33 = vpop.xlane.xlu1 %537 }
 0x26f   : > { %v451_v34 = vpop.xlane.xlu1 %450 }
 0x270   : > { %1089 = vrcp.f32 %v451_v34 }
 0x276   : > { %v1090_v35 = vpop.eup %1089  ;;  %v581_v56 = vpop.f32.mrf.mxu3 }
 0x277   : > { %v455_v36 = vmul.f32 %v1090_v35, %v451_v34 }
 0x279   : > { %v457_v37 = vsub.f32 2.0, %v455_v36 }
 0x27b   : > { %v459_v38 = vmul.f32 %v1090_v35, %v457_v37 }
 0x27d   : > { %v490_v40 = vmul.f32 %v486_v24, %v459_v38 }
 0x27f   : > { %492 = vst.msk [vmem:[#allocation2 + $0x8] sm:$0xff] %vm403_vm2, %v490_v40 }
 0x296   : > { %v633_v44 = vpop.xlane.xlu0 %632  ;;  %v584_v6 = vpop.f32.mrf.mxu3 }
 0x297   : > { %v637_v45 = vsub.f32 %v626_v26, %v633_v44 }
 0x299   : > { %v639_v47 = vmul.f32 1.442695, %v637_v45 }
 0x29b   : > { %1091 = vpow2.f32 %v639_v47 }
 0x29e   : > { %v541_v49 = vpop.xlane.xlu0 %540  ;;  %v636_v50 = vpop.xlane.xlu2 %635 }
 0x29f   : > { %1093 = vrcp.f32 %v541_v49  ;;  %v638_v51 = vsub.f32 %v629_v29, %v636_v50 }
 0x2a0   : > { %1095 = vpow2.f32 %v744_v48 }
 0x2a1   : > { %v1092_v52 = vpop.eup %1091  ;;  %v641_v54 = vmul.f32 1.442695, %v638_v51 }
 0x2a2   : > { %986 = vmatmul.msk.f32.vlgmr.msrb.gmra.mxu3 %vm433_vm7, %v1092_v52  ;;  %v643_v55 = vsel %vm433_vm7, %v1092_v52, 0.0 }
 0x2a3   : > { %1097 = vpow2.f32 %v641_v54  ;;  %644 = vadd.xlane.f32.xlu0 %v643_v55 }
 0x2a4   : > { %1099 = vpow2.f32 %v746_v58 }
 0x2a5   : > { %v1094_v57 = vpop.eup %1093  ;;  %1101 = vrcp.f32 %v1395_v33 }
 0x2a6   : > { %v545_v59 = vmul.f32 %v1094_v57, %v541_v49  ;;  %v1078_v60 = vpop.permute.xlu2 %1077  ;;  %v1096_v61 = vpop.eup %1095 }
 0x2a7   : > { %v1079_v63 = vunpack.i.l.bf16 %v1078_v60  ;;  %v748_v3 = vsel %vm433_vm7, %v1096_v61, 0.0  ;;  %v1080_v5 = vunpack.i.h.bf16 %v1078_v60 }
 0x2a8   : > { %v547_v0 = vsub.f32 2.0, %v545_v59 }
 0x2a9   : > { %v1098_v1 = vpop.eup %1097  ;;  %788 = vmatpush.msrb.mxu2 %v1079_v63 }
 0x2aa   : > { %v549_v2 = vmul.f32 %v1094_v57, %v547_v0  ;;  %987 = vmatmul.msk.f32.gmra.mxu3 %vm433_vm7, %v1098_v1  ;;  %v646_v4 = vsel %vm433_vm7, %v1098_v1, 0.0  ;;  %v1100_v8 = vpop.eup %1099 }
 0x2ab   : > { %749 = vadd.xlane.f32.xlu0 %v748_v3  ;;  %647 = vadd.xlane.f32.xlu2 %v646_v4  ;;  %v751_v9 = vsel %vm433_vm7, %v1100_v8, 0.0  ;;  %v1102_v11 = vpop.eup %1101 }
 0x2ac   : > { %789 = vmatpush.msrb.mxu2 %v1080_v5  ;;  %v588_v7 = vmul.f32 %v584_v6, %v549_v2  ;;  %v544_v12 = vmul.f32 %v1102_v11, %v1395_v33 }
 0x2ad   : > { %990 = vmatmul.msk.f32.vlgmr.msrb.gmra.mxu2 %vm433_vm7, %v1096_v61 }
 0x2ae   : > { %593 = vrot.lane.b32.xlu1 %v588_v7, %s1196_s29  ;;  %v546_v13 = vsub.f32 2.0, %v544_v12 }
 0x2b0   : > { %v548_v14 = vmul.f32 %v1102_v11, %v546_v13 }
 0x2b2   : > { %v587_v15 = vmul.f32 %v581_v56, %v548_v14 }
 0x2b3   : > { %752 = vadd.xlane.f32.xlu0 %v751_v9 }
 0x2b5   : > { %991 = vmatmul.msk.f32.gmra.mxu2 %vm433_vm7, %v1100_v8 }
 0x2bb   : > { %447 = vadd.xlane.f32.xlu0 %v446_v10 }
 0x2cf   : > { %591 = vrot.lane.b32.xlu0 %v587_v15, %s1196_s29  ;;  %s831_s29 = sshll.u32 %s828_s24, 4  ;;  %s832_s29 = int_to_ptr.hbm [resolvable:$true] %s831_s29 }
 0x2d0   : > { %s1127_s10 = sshra.s32 %s832_s29, 4  ;;  %s1128_s10 = int_to_ptr.hbm [resolvable:$true] %s1127_s10 }
 0x2d1   : > { %s1129_s21 = scalar_lea.hbm %s1128_s10, 16  ;;  %p1134_p1 = scmp.lt.s32.totalorder %s1128_s10, %s1464_s5 }
 0x2d2   : > { %p1130_p12 = scmp.ne.s32.totalorder %s1128_s10, %s1129_s21  ;;  %p1135_p2 = scmp.lt.s32.totalorder %s1133_s13, %s1129_s21 }
 0x2d4   : > { %p1131_p13 = pnand %p1130_p12, %p1270_p4  ;;  %p1136_p3 = por %p1135_p2, %p1134_p1 }
 0x2d6   : > { %p1132_p0 = pneg %p1131_p13 }
 0x2d8   : > { %p1137_p5 = pnand %p1136_p3, %p1132_p0 }
 0x316   : > { %v645_v16 = vpop.xlane.xlu0 %644 }
 0x317   : > { %1103 = vrcp.f32 %v645_v16 }
 0x31d   : > { %v1104_v17 = vpop.eup %1103 }
 0x31e   : > { %v651_v18 = vmul.f32 %v1104_v17, %v645_v16  ;;  %v750_v19 = vpop.xlane.xlu0 %749  ;;  %v648_v20 = vpop.xlane.xlu2 %647 }
 0x31f   : > { %1105 = vrcp.f32 %v648_v20 }
 0x320   : > { %v653_v21 = vsub.f32 2.0, %v651_v18  ;;  %v594_v23 = vpop.permute.xlu1 %593  ;;  %1107 = vrcp.f32 %v750_v19 }
 0x321   : > { %599 = vst.msk [vmem:[#allocation2 + $0x8] sm:$0xff] %vm597_vm10, %v594_v23 }
 0x322   : > { %v655_v62 = vmul.f32 %v1104_v17, %v653_v21 }
 0x325   : > { %v686_v24 = vpop.f32.mrf.mxu3  ;;  %v1106_v25 = vpop.eup %1105 }
 0x326   : > { %v692_v26 = vmul.f32 %v686_v24, %v655_v62  ;;  %v753_v27 = vpop.xlane.xlu0 %752  ;;  %v652_v28 = vmul.f32 %v1106_v25, %v648_v20  ;;  %v1108_v29 = vpop.eup %1107 }
 0x327   : > { %1109 = vrcp.f32 %v753_v27  ;;  %v756_v31 = vmul.f32 %v1108_v29, %v750_v19 }
 0x328   : > { %696 = vrot.lane.b32.xlu2 %v692_v26, %s1195_s27  ;;  %v654_v30 = vsub.f32 2.0, %v652_v28 }
 0x329   : > { %v758_v38 = vsub.f32 2.0, %v756_v31 }
 0x32a   : > { %v656_v32 = vmul.f32 %v1106_v25, %v654_v30 }
 0x32b   : > { %v760_v41 = vmul.f32 %v1108_v29, %v758_v38 }
 0x32d   : > { %v1110_v33 = vpop.eup %1109  ;;  %v689_v34 = vpop.f32.mrf.mxu3 }
 0x32e   : > { %v693_v35 = vmul.f32 %v689_v34, %v656_v32  ;;  %v448_v36 = vpop.xlane.xlu0 %447  ;;  %v757_v37 = vmul.f32 %v1110_v33, %v753_v27 }
 0x32f   : > { %1111 = vrcp.f32 %v448_v36 }
 0x330   : > { %v791_v39 = vpop.f32.mrf.mxu2  ;;  %698 = vrot.lane.b32.xlu0 %v693_v35, %s1195_s27  ;;  %v759_v40 = vsub.f32 2.0, %v757_v37 }
 0x331   : > { %v797_v44 = vmul.f32 %v791_v39, %v760_v41 }
 0x332   : > { %v761_v45 = vmul.f32 %v1110_v33, %v759_v40 }
 0x335   : > { %v1112_v42 = vpop.eup %1111 }
 0x336   : > { %v454_v43 = vmul.f32 %v1112_v42, %v448_v36 }
 0x338   : > { %v456_v46 = vsub.f32 2.0, %v454_v43  ;;  %v794_v47 = vpop.f32.mrf.mxu2  ;;  %801 = vrot.lane.b32.xlu0 %v797_v44, %s1194_s25 }
 0x339   : > { %v798_v48 = vmul.f32 %v794_v47, %v761_v45 }
 0x33a   : > { %v458_v49 = vmul.f32 %v1112_v42, %v456_v46 }
 0x33b   : > { %803 = vrot.lane.b32.xlu1 %v798_v48, %s1194_s25  ;;  %s309_s25 = scalar_lea.vmem [#allocation3], %s967_s12 }
 0x33c   : > { %v489_v50 = vmul.f32 %v1385_v22, %v458_v49  ;;  %s829_s27 = sshll.u32 %s309_s25, 4  ;;  %s830_s27 = int_to_ptr.vmem [resolvable:$true] %s829_s27 }
 0x33e   : > { %491 = vst.msk [vmem:[#allocation2] sm:$0xff] %vm403_vm2, %v489_v50 }
 0x341   : > { %v592_v51 = vpop.permute.xlu0 %591 }
 0x342   : > { %598 = vst.msk [vmem:[#allocation2] sm:$0xff] %vm597_vm10, %v592_v51 }
 0x382   : > { %v697_v52 = vpop.permute.xlu2 %696 }
 0x383   : > { %703 = vst.msk [vmem:[#allocation2] sm:$0xff] %vm702_vm11, %v697_v52 }
 0x3a2   : > { %v699_v53 = vpop.permute.xlu0 %698 }
 0x3a3   : > { %704 = vst.msk [vmem:[#allocation2 + $0x8] sm:$0xff] %vm702_vm11, %v699_v53 }
 0x3aa   : > { %v802_v54 = vpop.permute.xlu0 %801 }
 0x3ab   : > { %808 = vst.msk [vmem:[#allocation2] sm:$0xff] %vm807_vm12, %v802_v54 }
 0x3ad   : > { %v804_v55 = vpop.permute.xlu1 %803 }
 0x3ae   : > { %809 = vst.msk [vmem:[#allocation2 + $0x8] sm:$0xff] %vm807_vm12, %v804_v55 }
 0x3b2   : > { %v810_v22 = vld [vmem:[#allocation2] sm:$0xff] }
 0x3b3   : > { %812 = vst [vmem:[%s309_s25] sm:$0xff] %v810_v22 }
 0x3b5   : > { %v811_v56 = vld [vmem:[#allocation2 + $0x8] sm:$0xff] }
 0x3b6   : > { %813 = vst [vmem:[%s309_s25 + $0x8] sm:$0xff] %v811_v56 }
 0x3b7   : > { %1140 = shalt.err (!%p1137_p5)
}
 0x3b8   : > { %s1198_s8 = smov 128   ;;  %s1199_s15 = smov 8  }
 0x3b9   : > { %1002 = dma.vmem_to_hbm [thread:$0]  (%p1270_p4), %s830_s27, 256, %s832_s29, %s815_s9, %s1198_s8, %s1198_s8, %s1199_s15  }
 0x3ba PF: > { %p1008_p6 = scmp.ge.s32.totalorder %s1191_s23, 2  ;;  %s846_s16 = sand.u32 1, %s1171_s18  }
 0x3bb   : > { %s847_s17 = scalar_lea.sflag [#allocation4], %s846_s16 }
 0x3bc   : > { %p1005_p7 = pnand %p1008_p6, %p1277_p8 }
 0x3be   : > { %p1006_p9 = pneg %p1005_p7 }
 0x3c0   : > { %1166 = dma.done.wait (%p1006_p9), %s847_s17, 256  }
 0x3c1   : > { %1168 = vsyncadd (%p1006_p9), %s847_s17, 4294967040  ;;  %s18_s23 = sadd.s32 1, %s1191_s23   ;;  %s1467_s18 = smov %s1175_s19 }
 0x3c2   : > { %p15_p10 = scmp.ge.s32.totalorder %s18_s23, 4   ;;  %s1468_s19 = smov %s1179_s20 }
 0x3c3   : > { %s1469_s20 = smov %s1283_s6  ;;  %s1470_s21 = smov %s1187_s22 }
 0x3c4   : > { %s1471_s22 = smov %s1473_s26  ;;  %17 = sbr.rel (!%p15_p10) target bundleno = 4 (0x4), region = 87 }
 0x3c9   :  { %853 = vsyncpa [#allocation4], 1 }
 0x3ca   :  { %855 = vsyncpa [#allocation4 + $0x1], 1 }

</bundles_post_ra>
